<compile_context>
chip_gen: v5e
topology: v5e:2x2
jax: 0.10.0
libtpu: 0.0.40
codegen_flags: <defaults>
</compile_context>

<pallas_src>
import functools

import jax
import jax.numpy as jnp
from jax.experimental import pallas as pl
from jax.experimental.pallas import tpu as pltpu


def _round_up(v, m):
    return (v + m - 1) // m * m


def _classmix_partial_kernel(x_ref, y_ref, w_ref, out_ref):
    """Per-block weighted-BCE partial sums, reduced to an (8, LANE_W) slab on the VPU."""
    x = x_ref[...].astype(jnp.float32)
    y = y_ref[...].astype(jnp.float32)
    w = w_ref[...].astype(jnp.float32)

    # Numerically stable BCE-with-logits (identical to PyTorch):
    #   loss = max(x, 0) - x*y + log(1 + exp(-|x|))
    loss = jnp.maximum(x, 0.0) - x * y + jnp.log1p(jnp.exp(-jnp.abs(x)))
    lw = loss * w                                    # (block_rows, LANE_W)

    br, lane_w = lw.shape
    if br == 8:
        out_ref[...] = lw
    else:
        # Fold tile-rows: (br, W) -> (br//8, 8, W) matches the (8,128) vreg tiling,
        # so the axis-0 sum lowers to plain vreg adds (pure VPU, no XLU / no scalar RMW).
        out_ref[...] = jnp.sum(lw.reshape(br // 8, 8, lane_w), axis=0)


def classmix_loss(output, target, pixel_weight, *, lane_width=512, max_block_rows=512):
    """Pallas equivalent of ClassMixLoss.forward (weight=None, reduction='none' BCE).

    output:       [B, 1, H, W] logits (or [B, H, W])
    target:       [B, H, W]    (or [B, 1, H, W])
    pixel_weight: [B, H, W]
    returns: scalar f32 mean of the weighted per-pixel BCE loss.
    """
    if target.ndim == 3:
        target = target[:, None, :, :]               # target.unsqueeze(1)
    if output.ndim == 3:
        output = output[:, None, :, :]

    B, C, H, W = output.shape
    assert C == 1, "ClassMixLoss squeezes channel dim 1; expects C == 1"
    n = B * H * W                                     # true element count for the mean

    # Flatten; channel squeeze is implicit because C == 1 and layouts line up.
    x = output.reshape(-1)
    y = target.reshape(-1)
    w = pixel_weight.reshape(-1)

    # Lane-dense padded slab: (padded_rows, lane_width), padded weights are 0 so
    # padded elements contribute nothing to the sum.
    rows_needed = pl.cdiv(n, lane_width)
    block_rows = min(max_block_rows, _round_up(max(rows_needed, 1), 8))
    num_blocks = pl.cdiv(rows_needed, block_rows)
    padded_rows = num_blocks * block_rows
    padded_n = padded_rows * lane_width

    pad = padded_n - n
    if pad:
        x = jnp.pad(x, (0, pad))
        y = jnp.pad(y, (0, pad))
        w = jnp.pad(w, (0, pad))

    x2d = x.reshape(padded_rows, lane_width)
    y2d = y.reshape(padded_rows, lane_width)
    w2d = w.reshape(padded_rows, lane_width)

    in_spec = pl.BlockSpec((block_rows, lane_width), lambda i: (i, 0))
    out_spec = pl.BlockSpec((8, lane_width), lambda i: (i, 0))

    bytes_in = (x2d.size * x2d.dtype.itemsize
                + y2d.size * y2d.dtype.itemsize
                + w2d.size * w2d.dtype.itemsize)
    bytes_out = num_blocks * 8 * lane_width * 4
    cost = pl.CostEstimate(flops=7 * padded_n,
                           transcendentals=2 * padded_n,
                           bytes_accessed=bytes_in + bytes_out)

    partials = pl.pallas_call(
        _classmix_partial_kernel,
        out_shape=jax.ShapeDtypeStruct((num_blocks * 8, lane_width), jnp.float32),
        grid_spec=pltpu.PrefetchScalarGridSpec(
            num_scalar_prefetch=0,
            grid=(num_blocks,),
            in_specs=[in_spec, in_spec, in_spec],
            out_specs=out_spec,
        ),
        compiler_params=pltpu.CompilerParams(
            dimension_semantics=("parallel",),        # independent blocks -> both TCs on v7x
            vmem_limit_bytes=32 * 1024 * 1024,
        ),
        cost_estimate=cost,
    )(x2d, y2d, w2d)

    # Tiny final reduction + mean normalization (divide by the *unpadded* count).
    return jnp.sum(partials) / jnp.float32(n)


def _reference_loss(output, target, pixel_weight):
    """Pure-JAX reference mirroring the PyTorch module."""
    if target.ndim == 3:
        target = target[:, None, :, :]
    if output.ndim == 3:
        output = output[:, None, :, :]
    x = output.astype(jnp.float32)
    y = target.astype(jnp.float32)
    loss = jnp.maximum(x, 0.0) - x * y + jnp.log1p(jnp.exp(-jnp.abs(x)))
    weighted = jnp.squeeze(loss, axis=1) * pixel_weight.astype(jnp.float32)
    return weighted.mean()


if __name__ == "__main__":
    key = jax.random.PRNGKey(0)

    # --- case 1: original small demo shape (exercises lane-dense padding, W=16) ---
    k1, k2, k3, key = jax.random.split(key, 4)
    B, C, H, W = 2, 1, 16, 16
    output = jax.random.normal(k1, (B, C, H, W), dtype=jnp.float32)
    target = (jax.random.uniform(k2, (B, H, W)) > 0.5).astype(jnp.float32)
    pixel_weight = jax.random.uniform(k3, (B, H, W), dtype=jnp.float32)

    loss = classmix_loss(output, target, pixel_weight)
    loss = jax.block_until_ready(loss)
    ref = _reference_loss(output, target, pixel_weight)
    assert jnp.allclose(loss, ref, rtol=1e-5, atol=1e-6), (loss, ref)

    # --- case 2: non-aligned sizes (exercises zero-padding + row-fold reduction) ---
    k1, k2, k3, key = jax.random.split(key, 4)
    B, C, H, W = 3, 1, 48, 52
    output = jax.random.normal(k1, (B, C, H, W), dtype=jnp.float32)
    target = (jax.random.uniform(k2, (B, H, W)) > 0.5).astype(jnp.float32)
    pixel_weight = jax.random.uniform(k3, (B, H, W), dtype=jnp.float32)

    loss2 = jax.block_until_ready(classmix_loss(output, target, pixel_weight))
    ref2 = _reference_loss(output, target, pixel_weight)
    assert jnp.allclose(loss2, ref2, rtol=1e-5, atol=1e-6), (loss2, ref2)

    # --- case 3: force a multi-block grid (exercises the parallel grid path) ---
    loss3 = jax.block_until_ready(
        classmix_loss(output, target, pixel_weight, max_block_rows=8))
    assert jnp.allclose(loss3, ref2, rtol=1e-5, atol=1e-6), (loss3, ref2)

    print("KERNEL_OK")
</pallas_src>

<mosaic_0001>
module attributes {stable_mosaic.version = 11 : i64} {
  func.func @_classmix_partial_kernel(%arg0: i32, %arg1: memref<8x512xf32, #tpu.memory_space<vmem>>, %arg2: memref<8x512xf32, #tpu.memory_space<vmem>>, %arg3: memref<8x512xf32, #tpu.memory_space<vmem>>, %arg4: memref<8x512xf32, #tpu.memory_space<vmem>>) attributes {dimension_semantics = [#tpu.dimension_semantics<parallel>], iteration_bounds = array<i64: 1>, scalar_prefetch = 0 : i64, scratch_operands = 0 : i64, tpu.core_type = #tpu.core_type<tc>, window_params = [{transform_indices = @transform_0, window_bounds = array<i64: 8, 512>}, {transform_indices = @transform_1, window_bounds = array<i64: 8, 512>}, {transform_indices = @transform_2, window_bounds = array<i64: 8, 512>}, {transform_indices = @transform_3, window_bounds = array<i64: 8, 512>}]} {
    %c0 = arith.constant 0 : index
    %c0_0 = arith.constant 0 : index
    %0 = vector.load %arg1[%c0, %c0_0] : memref<8x512xf32, #tpu.memory_space<vmem>>, vector<8x512xf32>
    %c0_1 = arith.constant 0 : index
    %c0_2 = arith.constant 0 : index
    %1 = vector.load %arg2[%c0_1, %c0_2] : memref<8x512xf32, #tpu.memory_space<vmem>>, vector<8x512xf32>
    %c0_3 = arith.constant 0 : index
    %c0_4 = arith.constant 0 : index
    %2 = vector.load %arg3[%c0_3, %c0_4] : memref<8x512xf32, #tpu.memory_space<vmem>>, vector<8x512xf32>
    %cst = arith.constant 0.000000e+00 : f32
    %3 = vector.broadcast %cst : f32 to vector<8x512xf32>
    %4 = arith.maximumf %0, %3 : vector<8x512xf32>
    %5 = arith.mulf %0, %1 : vector<8x512xf32>
    %6 = arith.subf %4, %5 : vector<8x512xf32>
    %7 = math.absf %0 : vector<8x512xf32>
    %cst_5 = arith.constant 0.000000e+00 : f32
    %8 = vector.broadcast %cst_5 : f32 to vector<8x512xf32>
    %9 = arith.subf %8, %7 : vector<8x512xf32>
    %10 = math.exp %9 : vector<8x512xf32>
    %11 = math.log1p %10 : vector<8x512xf32>
    %12 = arith.addf %6, %11 : vector<8x512xf32>
    %13 = arith.mulf %12, %2 : vector<8x512xf32>
    %c0_6 = arith.constant 0 : index
    %c0_7 = arith.constant 0 : index
    %14 = vector.load %arg4[%c0_6, %c0_7] : memref<8x512xf32, #tpu.memory_space<vmem>>, vector<8x512xf32>
    tpu.vector_store %arg4[%c0_6, %c0_7], %13 {strides = array<i32>} : memref<8x512xf32, #tpu.memory_space<vmem>>, vector<8x512xf32>,
    return
  }
  func.func @transform_0(%arg0: i32) -> (i32, i32) {
    %c0_i32 = arith.constant 0 : i32
    %c0_i32_0 = arith.constant 0 : i32
    return %arg0, %c0_i32 : i32, i32
  }
  func.func @transform_1(%arg0: i32) -> (i32, i32) {
    %c0_i32 = arith.constant 0 : i32
    %c0_i32_0 = arith.constant 0 : i32
    return %arg0, %c0_i32 : i32, i32
  }
  func.func @transform_2(%arg0: i32) -> (i32, i32) {
    %c0_i32 = arith.constant 0 : i32
    %c0_i32_0 = arith.constant 0 : i32
    return %arg0, %c0_i32 : i32, i32
  }
  func.func @transform_3(%arg0: i32) -> (i32, i32) {
    %c0_i32 = arith.constant 0 : i32
    %c0_i32_0 = arith.constant 0 : i32
    return %arg0, %c0_i32 : i32, i32
  }
}

</mosaic_0001>

<bundles_post_ra>
// kernel: tpu_custom_call.1
= control target key start
LH: loop header
LB: loop body
LE: loop exit
PB: predicated region body
PF: predicated region fallthrough
CT: control target
= control target key end

     0   :  { %8 = vsyncpa [#allocation3], 0  ;;  %s342_s0 = inlined_call_operand.hbm [shape: f32[8,512], index: 0, kind: input, shape index: {}]   ;;  %s343_s1 = inlined_call_operand.hbm [shape: f32[8,512], index: 1, kind: input, shape index: {}]   ;;  %s344_s2 = inlined_call_operand.hbm [shape: f32[8,512], index: 2, kind: input, shape index: {}]   ;;  %s345_s3 = inlined_call_operand.hbm [shape: f32[8,512], index: 3, kind: output, shape index: {}]  }
   0x1   :  { %9 = vsyncpa [#allocation6], 0  ;;  %s27_s14 = sshll.u32 %s343_s1, 4  ;;  %s28_s14 = int_to_ptr.hbm [resolvable:$true] %s27_s14 }
   0x2   :  { %10 = vsyncpa [#allocation4], 0  ;;  %s284_s15 = smov [#allocation5]   ;;  %s16_s19 = sshll.u32 %s342_s0, 4  ;;  %s17_s19 = int_to_ptr.hbm [resolvable:$true] %s16_s19 }
   0x3   :  { %s29_s16 = sshll.u32 %s284_s15, 4  ;;  %s285_s20 = smov [#allocation2]   ;;  %s30_s16 = int_to_ptr.vmem [resolvable:$true] %s29_s16 }
   0x4   :  { %32 = dma.hbm_to_vmem [thread:$0]  %s28_s14, 512, %s30_s16, [#allocation6]  }
   0x5   :  { %s18_s21 = sshll.u32 %s285_s20, 4  ;;  %s38_s24 = sshll.u32 %s344_s2, 4  ;;  %s19_s21 = int_to_ptr.vmem [resolvable:$true] %s18_s21  ;;  %s39_s24 = int_to_ptr.hbm [resolvable:$true] %s38_s24 }
   0x6   :  { %21 = dma.hbm_to_vmem [thread:$0]  %s17_s19, 512, %s19_s21, [#allocation3]  }
   0x7   :  { %s286_s1 = smov [#allocation7]  }
   0x8   :  { %s40_s25 = sshll.u32 %s286_s1, 4  ;;  %s41_s25 = int_to_ptr.vmem [resolvable:$true] %s40_s25 }
   0x9   :  { %43 = dma.hbm_to_vmem [thread:$0]  %s39_s24, 512, %s41_s25, [#allocation6]  }
   0xa   :  { %278 = dma.done.wait [#allocation3], 512  }
   0xb   :  { %279 = vsyncadd [#allocation3], 4294966784 }
   0xc   :  { %280 = dma.done.wait [#allocation6], 1024  }
   0xd   :  { %281 = vsyncadd [#allocation6], 4294966272  ;;  %v56_v0 = vld [vmem:[#allocation2] sm:$0xff]  ;;  %v57_v2 = vld [vmem:[#allocation2 + $0x8] sm:$0xff]  ;;  %s287_s0 = smov [#allocation8]   ;;  %s151_s28 = sshll.u32 %s345_s3, 4  ;;  %s152_s28 = int_to_ptr.hbm [resolvable:$true] %s151_s28 }
   0xe   :  { %v80_v1 = vand.u32 2147483647, %v56_v0  ;;  %v81_v3 = vand.u32 2147483647, %v57_v2  ;;  %v317_v4 = vld [vmem:[#allocation2 + $0x10] sm:$0xff]  ;;  %v319_v6 = vld [vmem:[#allocation2 + $0x18] sm:$0xff] }
   0xf   :  { %v82_v8 = vand.u32 2147483647, %v317_v4  ;;  %v83_v10 = vand.u32 2147483647, %v319_v6  ;;  %v60_v17 = vld [vmem:[#allocation5] sm:$0xff]  ;;  %v61_v21 = vld [vmem:[#allocation5 + $0x8] sm:$0xff] }
  0x10   :  { %v84_v5 = vsub.f32 0.0, %v80_v1  ;;  %v85_v7 = vsub.f32 0.0, %v81_v3  ;;  %v68_v25 = vmax.f32 %v56_v0, 0.0  ;;  %v72_v26 = vmul.f32 %v60_v17, %v56_v0  ;;  %v62_v31 = vld [vmem:[#allocation5 + $0x10] sm:$0xff]  ;;  %v63_v36 = vld [vmem:[#allocation5 + $0x18] sm:$0xff]  ;;  %v64_v61 = vld [vmem:[#allocation7] sm:$0xff] }
  0x11   :  { %v86_v12 = vsub.f32 0.0, %v82_v8  ;;  %v87_v13 = vsub.f32 0.0, %v83_v10  ;;  %v69_v27 = vmax.f32 %v57_v2, 0.0  ;;  %v73_v30 = vmul.f32 %v61_v21, %v57_v2  ;;  %v65_v3 = vld [vmem:[#allocation7 + $0x8] sm:$0xff]  ;;  %s149_s2 = sshll.u32 %s287_s0, 4  ;;  %s150_s2 = int_to_ptr.vmem [resolvable:$true] %s149_s2 }
  0x12   :  { %v88_v9 = vmul.f32 1.442695, %v84_v5  ;;  %v90_v11 = vmul.f32 1.442695, %v85_v7  ;;  %v70_v39 = vmax.f32 %v317_v4, 0.0  ;;  %v74_v41 = vmul.f32 %v62_v31, %v317_v4 }
  0x13   :  { %v92_v14 = vmul.f32 1.442695, %v86_v12  ;;  %v94_v15 = vmul.f32 1.442695, %v87_v13  ;;  %v71_v43 = vmax.f32 %v319_v6, 0.0  ;;  %v75_v46 = vmul.f32 %v63_v36, %v319_v6  ;;  %v67_v13 = vld [vmem:[#allocation7 + $0x18] sm:$0xff] }
  0x14   :  { %166 = vpow2.f32 %v88_v9  ;;  %v76_v49 = vsub.f32 %v68_v25, %v72_v26  ;;  %v77_v55 = vsub.f32 %v69_v27, %v73_v30  ;;  %v78_v58 = vsub.f32 %v70_v39, %v74_v41  ;;  %v66_v9 = vld [vmem:[#allocation7 + $0x10] sm:$0xff] }
  0x15   :  { %168 = vpow2.f32 %v90_v11  ;;  %v79_v63 = vsub.f32 %v71_v43, %v75_v46 }
  0x16   :  { %170 = vpow2.f32 %v92_v14 }
  0x17   :  { %172 = vpow2.f32 %v94_v15 }
  0x1a   :  { %v167_v16 = vpop.eup %166 }
  0x1b   :  { %v169_v18 = vpop.eup %168  ;;  %v96_v19 = vadd.f32 1.0, %v167_v16  ;;  %v99_v20 = vmul.f32 -0.5, %v167_v16  ;;  %v102_v33 = vand.u32 2147483647, %v167_v16 }
  0x1c   :  { %v105_v22 = vadd.f32 1.0, %v169_v18  ;;  %v108_v23 = vmul.f32 -0.5, %v169_v18  ;;  %v171_v24 = vpop.eup %170  ;;  %v111_v38 = vand.u32 2147483647, %v169_v18 }
  0x1d   :  { %174 = vlog2.f32 %v96_v19  ;;  %v173_v28 = vpop.eup %172  ;;  %v100_v29 = vadd.f32 1.0, %v99_v20  ;;  %v114_v32 = vadd.f32 1.0, %v171_v24  ;;  %v117_v35 = vmul.f32 -0.5, %v171_v24 }
  0x1e   :  { %176 = vlog2.f32 %v105_v22  ;;  %v109_v34 = vadd.f32 1.0, %v108_v23  ;;  %v123_v37 = vadd.f32 1.0, %v173_v28  ;;  %v126_v40 = vmul.f32 -0.5, %v173_v28 }
  0x1f   :  { %178 = vlog2.f32 %v114_v32  ;;  %v118_v42 = vadd.f32 1.0, %v117_v35  ;;  %v101_v44 = vmul.f32 %v167_v16, %v100_v29  ;;  %v120_v45 = vand.u32 2147483647, %v171_v24 }
  0x20   :  { %180 = vlog2.f32 %v123_v37  ;;  %v127_v47 = vadd.f32 1.0, %v126_v40  ;;  %vm327_vm0 = vcmp.lt.f32.partialorder %v102_v33, 0.0004427343  ;;  %v110_v51 = vmul.f32 %v169_v18, %v109_v34 }
  0x21   :  { %v129_v52 = vand.u32 2147483647, %v173_v28  ;;  %vm331_vm1 = vcmp.lt.f32.partialorder %v111_v38, 0.0004427343  ;;  %v119_v59 = vmul.f32 %v171_v24, %v118_v42  ;;  %vm121_vm2 = vcmp.lt.f32.partialorder %v120_v45, 0.0004427343 }
  0x22   :  { %v128_v0 = vmul.f32 %v173_v28, %v127_v47 }
  0x23   :  { %v175_v48 = vpop.eup %174  ;;  %vm130_vm3 = vcmp.lt.f32.partialorder %v129_v52, 0.0004427343 }
  0x24   :  { %v177_v53 = vpop.eup %176  ;;  %v98_v54 = vmul.f32 0.6931472, %v175_v48 }
  0x25   :  { %v107_v57 = vmul.f32 0.6931472, %v177_v53  ;;  %v179_v60 = vpop.eup %178 }
  0x26   :  { %v104_v62 = vsel %vm327_vm0, %v101_v44, %v98_v54  ;;  %v181_v1 = vpop.eup %180  ;;  %v116_v5 = vmul.f32 0.6931472, %v179_v60 }
  0x27   :  { %v132_v2 = vadd.f32 %v104_v62, %v76_v49  ;;  %v113_v4 = vsel %vm331_vm1, %v110_v51, %v107_v57  ;;  %v125_v7 = vmul.f32 0.6931472, %v181_v1 }
  0x28   :  { %v133_v6 = vadd.f32 %v113_v4, %v77_v55  ;;  %v122_v10 = vsel %vm121_vm2, %v119_v59, %v116_v5 }
  0x29   :  { %v136_v8 = vmul.f32 %v132_v2, %v64_v61  ;;  %v134_v12 = vadd.f32 %v122_v10, %v78_v58  ;;  %v131_v14 = vsel %vm130_vm3, %v128_v0, %v125_v7 }
  0x2a   :  { %v137_v11 = vmul.f32 %v133_v6, %v65_v3  ;;  %v135_v15 = vadd.f32 %v131_v14, %v79_v63 }
  0x2b   :  { %140 = vst [vmem:[#allocation8] sm:$0xff] %v136_v8  ;;  %v138_v16 = vmul.f32 %v134_v12, %v66_v9 }
  0x2c   :  { %141 = vst [vmem:[#allocation8 + $0x8] sm:$0xff] %v137_v11  ;;  %v139_v17 = vmul.f32 %v135_v15, %v67_v13 }
  0x2d   :  { %142 = vst [vmem:[#allocation8 + $0x10] sm:$0xff] %v138_v16 }
  0x2e   :  { %143 = vst [vmem:[#allocation8 + $0x18] sm:$0xff] %v139_v17 }
  0x2f   :  { %154 = dma.vmem_to_hbm [thread:$0]  %s150_s2, 512, %s152_s28, [#allocation4]  }
  0x30   :  { %282 = dma.done.wait [#allocation4], 512  }
  0x31   :  { %283 = vsyncadd [#allocation4], 4294966784 }
  0x32   :  { %159 = vsyncpa [#allocation3], 1 }
  0x33   :  { %160 = vsyncpa [#allocation6], 1 }
  0x34   :  { %161 = vsyncpa [#allocation4], 1 }

</bundles_post_ra>
